<compile_context>
chip_gen: v5e
topology: v5e:2x2
jax: 0.10.0
libtpu: 0.0.40
codegen_flags: <defaults>
</compile_context>

<pallas_src>
import functools

import jax
import jax.numpy as jnp
from jax.experimental import pallas as pl
from jax.experimental.pallas import tpu as pltpu

IN_F = 104
H1, H2, H3 = 32, 16, 8
LANE = 128


def mlp_kernel(xt_ref, w1_ref, b1_ref, w2_ref, b2_ref, w3_ref, b3_ref,
               w4_ref, b4_ref, o_ref):
    """4-layer MLP on one feature-major (IN_F, TB) batch tile."""
    xt = xt_ref[...]                                        # (104, TB) bf16

    # fc1 + ReLU : (32,104)@(104,TB), f32 accumulation, f32 epilogue.
    h1 = jnp.dot(w1_ref[...], xt, preferred_element_type=jnp.float32)
    h1 = jnp.maximum(h1 + b1_ref[...], 0.0)                 # (32, TB) f32

    # fc2 + ReLU : (16,32)@(32,TB)
    h2 = jnp.dot(w2_ref[...], h1.astype(jnp.bfloat16),
                 preferred_element_type=jnp.float32)
    h2 = jnp.maximum(h2 + b2_ref[...], 0.0)                 # (16, TB) f32

    # fc3 + ReLU : (8,16)@(16,TB)
    h3 = jnp.dot(w3_ref[...], h2.astype(jnp.bfloat16),
                 preferred_element_type=jnp.float32)
    h3 = jnp.maximum(h3 + b3_ref[...], 0.0)                 # (8, TB) f32

    # fc4 : f32 sublane-weighted reduce (8,TB)->(1,TB); lane-dense output row.
    out = jnp.sum(h3 * w4_ref[...], axis=0, keepdims=True) + b4_ref[...]
    o_ref[...] = out.astype(o_ref.dtype)                    # (1, TB)


def _round_up(n, m):
    return (n + m - 1) // m * m


def _choose_tile(batch, tile_b):
    """Lane-aligned batch tile; prefers >=2 grid steps (v7x dual-TC sharding)."""
    tb = _round_up(min(int(tile_b), _round_up(batch, LANE)), LANE)
    if batch > LANE:
        two_step = _round_up(-(-_round_up(batch, LANE) // 2), LANE)
        tb = min(tb, max(LANE, two_step))
    return tb


@functools.partial(jax.jit, static_argnames=("tile_b",))
def mlp_forward(x, params, *, tile_b=8192):
    """Whole 4-layer MLP forward in one batch-tiled pallas_call."""
    (w1, b1), (w2, b2), (w3, b3), (w4, b4) = params
    B = x.shape[0]
    TB = _choose_tile(B, tile_b)
    Bpad = _round_up(B, TB)

    # Feature-major input slab: cast+transpose+pad fuse into one XLA pass; bf16
    # halves that pass's write and the kernel-side HBM read of x.
    xt = jnp.pad(x.astype(jnp.bfloat16).T, ((0, 0), (0, Bpad - B)))  # (104,Bpad)

    # Weights pre-cast to bf16 once (MXU input dtype); biases stay f32.
    w1b = w1.astype(jnp.bfloat16)                       # (32, 104)
    w2b = w2.astype(jnp.bfloat16)                       # (16, 32)
    w3b = w3.astype(jnp.bfloat16)                       # (8, 16)
    b1c = b1.astype(jnp.float32).reshape(H1, 1)
    b2c = b2.astype(jnp.float32).reshape(H2, 1)
    b3c = b3.astype(jnp.float32).reshape(H3, 1)
    w4c = w4.astype(jnp.float32).reshape(H3, 1)         # fc4 weights as a column
    b4c = b4.astype(jnp.float32).reshape(1, 1)

    def res(shape):                                     # VMEM-resident param block
        return pl.BlockSpec(shape, lambda i: (0, 0))

    out = pl.pallas_call(
        mlp_kernel,
        out_shape=jax.ShapeDtypeStruct((1, Bpad), jnp.float32),
        grid=(Bpad // TB,),
        in_specs=[
            pl.BlockSpec((IN_F, TB), lambda i: (0, i)),   # x^T: streamed per batch tile
            res((H1, IN_F)), res((H1, 1)),                # fc1 W, b
            res((H2, H1)),  res((H2, 1)),                 # fc2 W, b
            res((H3, H2)),  res((H3, 1)),                 # fc3 W, b
            res((H3, 1)),   res((1, 1)),                  # fc4 w column, b
        ],
        out_specs=pl.BlockSpec((1, TB), lambda i: (0, i)),  # lane-dense output row
        compiler_params=pltpu.CompilerParams(
            dimension_semantics=("parallel",),   # shard batch tiles across v7x's 2 TCs
            vmem_limit_bytes=32 * 1024 * 1024,   # TB=8192: ~6 MiB used, ample headroom
        ),
    )(xt, w1b, b1c, w2b, b2c, w3b, b3c, w4c, b4c)
    return out[0, :B].reshape(B, 1)


def init_params(key):
    """Deterministic init in PyTorch nn.Linear layout: W (out, in), b (out,)."""
    dims = [(IN_F, H1), (H1, H2), (H2, H3), (H3, 1)]
    params = []
    for i, (fan_in, fan_out) in enumerate(dims):
        kw, kb = jax.random.split(jax.random.fold_in(key, i))
        bound = 1.0 / (fan_in ** 0.5)
        w = jax.random.uniform(kw, (fan_out, fan_in), jnp.float32, -bound, bound)
        b = jax.random.uniform(kb, (fan_out,), jnp.float32, -bound, bound)
        params.append((w, b))
    return params


def reference_forward(x, params):
    """Pure-JAX reference mirroring the kernel numerics (bf16 MXU inputs, f32 accum)."""
    (w1, b1), (w2, b2), (w3, b3), (w4, b4) = params
    bf = lambda a: a.astype(jnp.bfloat16).astype(jnp.float32)
    hi = jax.lax.Precision.HIGHEST
    h1 = jnp.maximum(jnp.dot(bf(x), bf(w1.T), precision=hi) + b1, 0.0)
    h2 = jnp.maximum(jnp.dot(bf(h1), bf(w2.T), precision=hi) + b2, 0.0)
    h3 = jnp.maximum(jnp.dot(bf(h2), bf(w3.T), precision=hi) + b3, 0.0)
    return jnp.sum(h3 * w4[0], axis=-1, keepdims=True) + b4


if __name__ == "__main__":
    key = jax.random.PRNGKey(0)
    kx, kp = jax.random.split(key)
    params = init_params(kp)

    # (B=304): TB capped to 256 -> 2-step parallel grid + tail padding path.
    # (B=8):   single 128-wide tile, small-batch path.
    # (B=1024, tile=256): 4-step grid exercising the resident-weight pipeline.
    for B, tb in ((304, 8192), (8, 8192), (1024, 256)):
        x = jax.random.normal(jax.random.fold_in(kx, B), (B, IN_F), dtype=jnp.float32)
        out = jax.block_until_ready(mlp_forward(x, params, tile_b=tb))
        ref = reference_forward(x, params)
        assert out.shape == (B, 1), out.shape
        err = float(jnp.max(jnp.abs(out - ref)))
        assert jnp.allclose(out, ref, atol=2e-3, rtol=2e-3), (
            f"mismatch vs reference (B={B}): max abs err {err}")

    print("KERNEL_OK")
</pallas_src>

<mosaic_0001>
module attributes {stable_mosaic.version = 11 : i64} {
  func.func @mlp_kernel(%arg0: i32, %arg1: memref<104x256xbf16, #tpu.memory_space<vmem>>, %arg2: memref<32x104xbf16, #tpu.memory_space<vmem>>, %arg3: memref<32x1xf32, #tpu.memory_space<vmem>>, %arg4: memref<16x32xbf16, #tpu.memory_space<vmem>>, %arg5: memref<16x1xf32, #tpu.memory_space<vmem>>, %arg6: memref<8x16xbf16, #tpu.memory_space<vmem>>, %arg7: memref<8x1xf32, #tpu.memory_space<vmem>>, %arg8: memref<8x1xf32, #tpu.memory_space<vmem>>, %arg9: memref<1x1xf32, #tpu.memory_space<vmem>>, %arg10: memref<1x256xf32, #tpu.memory_space<vmem>>) attributes {dimension_semantics = [#tpu.dimension_semantics<parallel>], iteration_bounds = array<i64: 2>, scalar_prefetch = 0 : i64, scratch_operands = 0 : i64, tpu.core_type = #tpu.core_type<tc>, window_params = [{transform_indices = @transform_0, window_bounds = array<i64: 104, 256>}, {pipeline_mode = #tpu.pipeline_mode<synchronous>, transform_indices = @transform_1, window_bounds = array<i64: 32, 104>}, {pipeline_mode = #tpu.pipeline_mode<synchronous>, transform_indices = @transform_2, window_bounds = array<i64: 32, 1>}, {pipeline_mode = #tpu.pipeline_mode<synchronous>, transform_indices = @transform_3, window_bounds = array<i64: 16, 32>}, {pipeline_mode = #tpu.pipeline_mode<synchronous>, transform_indices = @transform_4, window_bounds = array<i64: 16, 1>}, {pipeline_mode = #tpu.pipeline_mode<synchronous>, transform_indices = @transform_5, window_bounds = array<i64: 8, 16>}, {pipeline_mode = #tpu.pipeline_mode<synchronous>, transform_indices = @transform_6, window_bounds = array<i64: 8, 1>}, {pipeline_mode = #tpu.pipeline_mode<synchronous>, transform_indices = @transform_7, window_bounds = array<i64: 8, 1>}, {pipeline_mode = #tpu.pipeline_mode<synchronous>, transform_indices = @transform_8, window_bounds = array<i64: 1, 1>}, {transform_indices = @transform_9, window_bounds = array<i64: 1, 256>}]} {
    %c0 = arith.constant 0 : index
    %c0_0 = arith.constant 0 : index
    %0 = vector.load %arg1[%c0, %c0_0] : memref<104x256xbf16, #tpu.memory_space<vmem>>, vector<104x256xbf16>
    %c0_1 = arith.constant 0 : index
    %c0_2 = arith.constant 0 : index
    %1 = vector.load %arg2[%c0_1, %c0_2] : memref<32x104xbf16, #tpu.memory_space<vmem>>, vector<32x104xbf16>
    %cst = arith.constant dense<0.000000e+00> : vector<32x256xf32>
    %2 = tpu.matmul %1, %0, %cst {dimension_numbers = #tpu.dot_dimension_numbers<[1], [0], [0], [1], [0, 0, 1, 1], [], []>} : vector<32x104xbf16>, vector<104x256xbf16>, vector<32x256xf32> -> vector<32x256xf32>
    %c0_3 = arith.constant 0 : index
    %c0_4 = arith.constant 0 : index
    %3 = vector.load %arg3[%c0_3, %c0_4] : memref<32x1xf32, #tpu.memory_space<vmem>>, vector<32x1xf32>
    %4 = vector.broadcast %3 : vector<32x1xf32> to vector<32x256xf32>
    %5 = arith.addf %2, %4 : vector<32x256xf32>
    %cst_5 = arith.constant 0.000000e+00 : f32
    %6 = vector.broadcast %cst_5 : f32 to vector<32x256xf32>
    %7 = arith.maximumf %5, %6 : vector<32x256xf32>
    %c0_6 = arith.constant 0 : index
    %c0_7 = arith.constant 0 : index
    %8 = vector.load %arg4[%c0_6, %c0_7] : memref<16x32xbf16, #tpu.memory_space<vmem>>, vector<16x32xbf16>
    %9 = arith.truncf %7 : vector<32x256xf32> to vector<32x256xbf16>
    %cst_8 = arith.constant dense<0.000000e+00> : vector<16x256xf32>
    %10 = tpu.matmul %8, %9, %cst_8 {dimension_numbers = #tpu.dot_dimension_numbers<[1], [0], [0], [1], [0, 0, 1, 1], [], []>} : vector<16x32xbf16>, vector<32x256xbf16>, vector<16x256xf32> -> vector<16x256xf32>
    %c0_9 = arith.constant 0 : index
    %c0_10 = arith.constant 0 : index
    %11 = vector.load %arg5[%c0_9, %c0_10] : memref<16x1xf32, #tpu.memory_space<vmem>>, vector<16x1xf32>
    %12 = vector.broadcast %11 : vector<16x1xf32> to vector<16x256xf32>
    %13 = arith.addf %10, %12 : vector<16x256xf32>
    %cst_11 = arith.constant 0.000000e+00 : f32
    %14 = vector.broadcast %cst_11 : f32 to vector<16x256xf32>
    %15 = arith.maximumf %13, %14 : vector<16x256xf32>
    %c0_12 = arith.constant 0 : index
    %c0_13 = arith.constant 0 : index
    %16 = vector.load %arg6[%c0_12, %c0_13] : memref<8x16xbf16, #tpu.memory_space<vmem>>, vector<8x16xbf16>
    %17 = arith.truncf %15 : vector<16x256xf32> to vector<16x256xbf16>
    %cst_14 = arith.constant dense<0.000000e+00> : vector<8x256xf32>
    %18 = tpu.matmul %16, %17, %cst_14 {dimension_numbers = #tpu.dot_dimension_numbers<[1], [0], [0], [1], [0, 0, 1, 1], [], []>} : vector<8x16xbf16>, vector<16x256xbf16>, vector<8x256xf32> -> vector<8x256xf32>
    %c0_15 = arith.constant 0 : index
    %c0_16 = arith.constant 0 : index
    %19 = vector.load %arg7[%c0_15, %c0_16] : memref<8x1xf32, #tpu.memory_space<vmem>>, vector<8x1xf32>
    %20 = vector.broadcast %19 : vector<8x1xf32> to vector<8x256xf32>
    %21 = arith.addf %18, %20 : vector<8x256xf32>
    %cst_17 = arith.constant 0.000000e+00 : f32
    %22 = vector.broadcast %cst_17 : f32 to vector<8x256xf32>
    %23 = arith.maximumf %21, %22 : vector<8x256xf32>
    %c0_18 = arith.constant 0 : index
    %c0_19 = arith.constant 0 : index
    %24 = vector.load %arg8[%c0_18, %c0_19] : memref<8x1xf32, #tpu.memory_space<vmem>>, vector<8x1xf32>
    %25 = vector.broadcast %24 : vector<8x1xf32> to vector<8x256xf32>
    %26 = arith.mulf %23, %25 : vector<8x256xf32>
    %cst_20 = arith.constant dense<0.000000e+00> : vector<256xf32>
    %27 = vector.multi_reduction <add>, %26, %cst_20 [0] : vector<8x256xf32> to vector<256xf32>
    %28 = vector.shape_cast %27 : vector<256xf32> to vector<1x256xf32>
    %c0_21 = arith.constant 0 : index
    %c0_22 = arith.constant 0 : index
    %29 = vector.load %arg9[%c0_21, %c0_22] : memref<1x1xf32, #tpu.memory_space<vmem>>, vector<1x1xf32>
    %30 = vector.broadcast %29 : vector<1x1xf32> to vector<1x256xf32>
    %31 = arith.addf %28, %30 : vector<1x256xf32>
    %c0_23 = arith.constant 0 : index
    %c0_24 = arith.constant 0 : index
    %32 = vector.load %arg10[%c0_23, %c0_24] : memref<1x256xf32, #tpu.memory_space<vmem>>, vector<1x256xf32>
    tpu.vector_store %arg10[%c0_23, %c0_24], %31 {strides = array<i32>} : memref<1x256xf32, #tpu.memory_space<vmem>>, vector<1x256xf32>,
    return
  }
  func.func @transform_0(%arg0: i32) -> (i32, i32) {
    %c0_i32 = arith.constant 0 : i32
    %c0_i32_0 = arith.constant 0 : i32
    return %c0_i32, %arg0 : i32, i32
  }
  func.func @transform_1(%arg0: i32) -> (i32, i32) {
    %c0_i32 = arith.constant 0 : i32
    %c0_i32_0 = arith.constant 0 : i32
    %c0_i32_1 = arith.constant 0 : i32
    return %c0_i32, %c0_i32_0 : i32, i32
  }
  func.func @transform_2(%arg0: i32) -> (i32, i32) {
    %c0_i32 = arith.constant 0 : i32
    %c0_i32_0 = arith.constant 0 : i32
    %c0_i32_1 = arith.constant 0 : i32
    return %c0_i32, %c0_i32_0 : i32, i32
  }
  func.func @transform_3(%arg0: i32) -> (i32, i32) {
    %c0_i32 = arith.constant 0 : i32
    %c0_i32_0 = arith.constant 0 : i32
    %c0_i32_1 = arith.constant 0 : i32
    return %c0_i32, %c0_i32_0 : i32, i32
  }
  func.func @transform_4(%arg0: i32) -> (i32, i32) {
    %c0_i32 = arith.constant 0 : i32
    %c0_i32_0 = arith.constant 0 : i32
    %c0_i32_1 = arith.constant 0 : i32
    return %c0_i32, %c0_i32_0 : i32, i32
  }
  func.func @transform_5(%arg0: i32) -> (i32, i32) {
    %c0_i32 = arith.constant 0 : i32
    %c0_i32_0 = arith.constant 0 : i32
    %c0_i32_1 = arith.constant 0 : i32
    return %c0_i32, %c0_i32_0 : i32, i32
  }
  func.func @transform_6(%arg0: i32) -> (i32, i32) {
    %c0_i32 = arith.constant 0 : i32
    %c0_i32_0 = arith.constant 0 : i32
    %c0_i32_1 = arith.constant 0 : i32
    return %c0_i32, %c0_i32_0 : i32, i32
  }
  func.func @transform_7(%arg0: i32) -> (i32, i32) {
    %c0_i32 = arith.constant 0 : i32
    %c0_i32_0 = arith.constant 0 : i32
    %c0_i32_1 = arith.constant 0 : i32
    return %c0_i32, %c0_i32_0 : i32, i32
  }
  func.func @transform_8(%arg0: i32) -> (i32, i32) {
    %c0_i32 = arith.constant 0 : i32
    %c0_i32_0 = arith.constant 0 : i32
    %c0_i32_1 = arith.constant 0 : i32
    return %c0_i32, %c0_i32_0 : i32, i32
  }
  func.func @transform_9(%arg0: i32) -> (i32, i32) {
    %c0_i32 = arith.constant 0 : i32
    %c0_i32_0 = arith.constant 0 : i32
    return %c0_i32, %arg0 : i32, i32
  }
}

</mosaic_0001>

<bundles_post_ra>
// kernel: mlp_forward.1
= control target key start
LH: loop header
LB: loop body
LE: loop exit
PB: predicated region body
PF: predicated region fallthrough
CT: control target
= control target key end

     0   :  { %s1109_s0 = inlined_call_operand.vmem [shape: bf16[104,512], index: 0, kind: input, shape index: {}]   ;;  %s1110_s1 = inlined_call_operand.vmem [shape: bf16[32,104], index: 1, kind: input, shape index: {}]   ;;  %s1111_s2 = inlined_call_operand.vmem [shape: f32[32,1], index: 2, kind: input, shape index: {}]   ;;  %s1112_s3 = inlined_call_operand.vmem [shape: bf16[16,32], index: 3, kind: input, shape index: {}]   ;;  %s1113_s4 = inlined_call_operand.vmem [shape: f32[16,1], index: 4, kind: input, shape index: {}]   ;;  %s1114_s5 = inlined_call_operand.vmem [shape: bf16[8,16], index: 5, kind: input, shape index: {}]   ;;  %s1115_s6 = inlined_call_operand.vmem [shape: f32[8,1], index: 6, kind: input, shape index: {}]   ;;  %s1116_s7 = inlined_call_operand.vmem [shape: f32[8,1], index: 7, kind: input, shape index: {}]   ;;  %s1117_s8 = inlined_call_operand.<no memory space> [shape: f32[1,1], index: 8, kind: input, shape index: {}]   ;;  %s1118_s9 = inlined_call_operand.vmem [shape: f32[1,512], index: 9, kind: output, shape index: {}]  }
   0x1   :  { %v14_v0 = vstv %s1117_s8 }
   0x2   :  { %15 = vst [vmem:[#allocation2] sm:$0x1] %v14_v0 }
   0x3   :  { %s994_s11 = smov 0   ;;  %s996_s12 = smov 0  }
   0x4   :  { %s998_s13 = smov 0  }
   0x5 LB: > { %s792_s8 = sadd.s32 4294967295, %s938_s13   ;;  %s1011_s14 = sadd.s32 1, %s938_s13   ;;  %s938_s13 = sphi %s998_s13, %s1121_s13   ;;  %s934_s12 = sphi %s996_s12, %s1120_s12   ;;  %s930_s11 = sphi %s994_s11, %s1119_s11  }
   0x6   : > { %s25_s15 = ssub.s32 %s938_s13, %s1011_s14  ;;  %s28_s16 = sadd.s32 1, %s934_s12 }
   0x7   : > { %p26_p0 = scmp.eq.s32.totalorder %s25_s15, 0  ;;  %p35_p1 = scmp.ne.s32.totalorder %s934_s12, %s930_s11 }
   0x8   : > { %p36_p2 = scmp.eq.s32.totalorder %s938_s13, 0  ;;  %p795_p4 = scmp.ge.s32.totalorder %s938_s13, 2 }
   0x9   : > { %s1020_s17 = scalar_select %p26_p0, %s934_s12, %s28_s16  }
   0xa   : > { %p37_p3 = por %p36_p2, %p35_p1  ;;  %279 = sbr.rel (%p795_p4) target bundleno = 32 (0x20), region = 48 }
   0xf   : > { %282 = sbr.rel (!%p37_p3) target bundleno = 32 (0x20), region = 52  ;;  %s284_s18 = sand.u32 (%p37_p3), 1, %s934_s12  }
  0x10   : > { %s870_s19 = sshll.u32 (%p37_p3), %s938_s13, 3  ;;  %s886_s20 = smul.u32 (%p37_p3), 104, %s284_s18 }
  0x11   : > { %s289_s23 = scalar_lea.vmem (%p37_p3), %s1109_s0, %s870_s19 }
  0x12   : > { %v342_v1 = vld [vmem:[%s289_s23] sm:$0xff] (%p37_p3)  ;;  %v344_v2 = vld [vmem:[%s289_s23 + $0x10] sm:$0xff] (%p37_p3)  ;;  %s286_s24 = scalar_lea.vmem (%p37_p3), [#allocation3], %s886_s20 }
  0x13   : > { %v346_v3 = vld [vmem:[%s289_s23 + $0x20] sm:$0xff] (%p37_p3)  ;;  %343 = vst [vmem:[%s286_s24] sm:$0xff] (%p37_p3), %v342_v1  ;;  %v348_v4 = vld [vmem:[%s289_s23 + $0x30] sm:$0xff] (%p37_p3) }
  0x14   : > { %345 = vst [vmem:[%s286_s24 + $0x8] sm:$0xff] %v344_v2  ;;  %v350_v5 = vld [vmem:[%s289_s23 + $0x40] sm:$0xff]  ;;  %v352_v6 = vld [vmem:[%s289_s23 + $0x50] sm:$0xff] }
  0x15   : > { %347 = vst [vmem:[%s286_s24 + $0x10] sm:$0xff] %v346_v3  ;;  %v354_v7 = vld [vmem:[%s289_s23 + $0x60] sm:$0xff]  ;;  %v356_v8 = vld [vmem:[%s289_s23 + $0x70] sm:$0xff] }
  0x16   : > { %349 = vst [vmem:[%s286_s24 + $0x18] sm:$0xff] %v348_v4  ;;  %v358_v9 = vld [vmem:[%s289_s23 + $0x80] sm:$0xff]  ;;  %v360_v10 = vld [vmem:[%s289_s23 + $0x90] sm:$0xff] }
  0x17   : > { %351 = vst [vmem:[%s286_s24 + $0x20] sm:$0xff] %v350_v5  ;;  %v362_v11 = vld [vmem:[%s289_s23 + $0xa0] sm:$0xff]  ;;  %v364_v12 = vld [vmem:[%s289_s23 + $0xb0] sm:$0xff] }
  0x18   : > { %353 = vst [vmem:[%s286_s24 + $0x28] sm:$0xff] %v352_v6  ;;  %v366_v13 = vld [vmem:[%s289_s23 + $0xc0] sm:$0xff] }
  0x19   : > { %355 = vst [vmem:[%s286_s24 + $0x30] sm:$0xff] %v354_v7 }
  0x1a   : > { %357 = vst [vmem:[%s286_s24 + $0x38] sm:$0xff] %v356_v8 }
  0x1b   : > { %359 = vst [vmem:[%s286_s24 + $0x40] sm:$0xff] %v358_v9 }
  0x1c   : > { %361 = vst [vmem:[%s286_s24 + $0x48] sm:$0xff] %v360_v10 }
  0x1d   : > { %363 = vst [vmem:[%s286_s24 + $0x50] sm:$0xff] %v362_v11 }
  0x1e   : > { %365 = vst [vmem:[%s286_s24 + $0x58] sm:$0xff] %v364_v12 }
  0x1f   : > { %367 = vst [vmem:[%s286_s24 + $0x60] sm:$0xff] %v366_v13 }
  0x20 PF: > { %p798_p5 = scmp.ge.s32.totalorder %s938_s13, 1  ;;  %p372_p6 = scmp.lt.s32.totalorder %s938_s13, 3 }
  0x22   : > { %p373_p7 = pnand %p798_p5, %p372_p6 }
  0x23   : > { %s379_s25 = sand.u32 (!%p373_p7), 1, %s930_s11   ;;  %s799_s18 = sshll.u32 (!%p373_p7), %s792_s8, 1 }
  0x24   : > { %376 = sbr.rel (%p373_p7) target bundleno = 542 (0x21e), region = 90  ;;  %p415_p8 = scmp.lt.s32.totalorder (!%p373_p7), %s799_s18, 3 }
  0x25   : > { %s887_s26 = smul.u32 (!%p373_p7), 104, %s379_s25 }
  0x27   : > { %s1031_s27 = scalar_lea.vmem (!%p373_p7), [#allocation3], %s887_s26 }
  0x29   : > { %v432_v14 = vld [vmem:[%s1031_s27 + $0x60] sm:$0xff]  ;;  %vm543_vm0 = vcmask 1043456   ;;  %v850_v17 = vld [vmem:[%s1031_s27 + $0x50] sm:$0xf]  ;;  %v882_v20 = vld [vmem:[%s1031_s27 + $0x54] sm:$0xf0] }
  0x2a   : > { %v508_v15 = vunpack.c.l.b16 %v432_v14  ;;  %v509_v16 = vunpack.c.h.b16 %v432_v14  ;;  %v881_v21 = vld [vmem:[%s1031_s27 + $0x54] sm:$0xf]  ;;  %v852_v22 = vld [vmem:[%s1031_s27 + $0x58] sm:$0xf0]  ;;  %v851_v25 = vor.u32 %v882_v20, %v850_v17  ;;  %v842_v27 = vld [vmem:[%s1031_s27 + $0x40] sm:$0xf] }
  0x2b   : > { %v855_v26 = vor.u32 %v881_v21, %v852_v22  ;;  %v880_v28 = vld [vmem:[%s1031_s27 + $0x44] sm:$0xf0]  ;;  %v879_v29 = vld [vmem:[%s1031_s27 + $0x44] sm:$0xf]  ;;  %v844_v30 = vld [vmem:[%s1031_s27 + $0x48] sm:$0xf0] }
  0x2c   : > { %v522_v18 = vpack.c.b16 %v508_v15, %v508_v15  ;;  %v523_v19 = vpack.c.b16 %v509_v16, %v509_v16  ;;  %v439_v31 = vld [vmem:[%s1111_s2 + $0x10] sm:$0xff]  ;;  %v940_v32 = vmov 0   ;;  %v437_v33 = vld [vmem:[%s1111_s2] sm:$0xff]  ;;  %v843_v34 = vor.u32 %v880_v28, %v842_v27  ;;  %v440_v46 = vld [vmem:[%s1111_s2 + $0x18] sm:$0xff]  ;;  %s1123_s18 = smov (!%p415_p8, %s799_s18), 3 }
  0x2d   : > { %914 = vset.pattern.permute.xlu1 %v940_v32  ;;  %913 = vset.pattern.permute.xlu0 %v940_v32  ;;  %v847_v35 = vor.u32 %v879_v29, %v844_v30  ;;  %v834_v36 = vld [vmem:[%s1031_s27 + $0x30] sm:$0xf]  ;;  %v878_v37 = vld [vmem:[%s1031_s27 + $0x34] sm:$0xf0]  ;;  %v877_v38 = vld [vmem:[%s1031_s27 + $0x34] sm:$0xf]  ;;  %s417_s13 = scalar_lea.vmem %s1118_s9, %s1123_s18 }
  0x2e   : > { %v545_v23 = vsel %vm543_vm0, %v522_v18, 0  ;;  %v548_v24 = vsel %vm543_vm0, %v523_v19, 0  ;;  %v836_v39 = vld [vmem:[%s1031_s27 + $0x38] sm:$0xf0]  ;;  %453 = vperm.xlu0 %913, %v439_v31   ;;  %443 = vperm.xlu1 %914, %v437_v33   ;;  %v835_v40 = vor.u32 %v878_v37, %v834_v36  ;;  %v826_v42 = vld [vmem:[%s1031_s27 + $0x20] sm:$0xf] }
  0x2f   : > { %551 = vmatpush.bf16.msra.mxu0 %v545_v23  ;;  %570 = vmatpush.bf16.msra.mxu1 %v548_v24  ;;  %v839_v41 = vor.u32 %v877_v38, %v836_v39  ;;  %v876_v43 = vld [vmem:[%s1031_s27 + $0x24] sm:$0xf0]  ;;  %v875_v44 = vld [vmem:[%s1031_s27 + $0x24] sm:$0xf]  ;;  %v828_v45 = vld [vmem:[%s1031_s27 + $0x28] sm:$0xf0] }
  0x30   : > { %915 = vset.pattern.permute.xlu2 %v940_v32  ;;  %v438_v47 = vld [vmem:[%s1111_s2 + $0x8] sm:$0xff]  ;;  %v827_v48 = vor.u32 %v876_v43, %v826_v42  ;;  %v831_v49 = vor.u32 %v875_v44, %v828_v45  ;;  %v818_v50 = vld [vmem:[%s1031_s27 + $0x10] sm:$0xf]  ;;  %v874_v51 = vld [vmem:[%s1031_s27 + $0x14] sm:$0xf0]  ;;  %vm536_vm1 = vcmask 850944  }
  0x31   : > { %v873_v52 = vld [vmem:[%s1031_s27 + $0x14] sm:$0xf]  ;;  %v820_v53 = vld [vmem:[%s1031_s27 + $0x18] sm:$0xf0]  ;;  %v819_v54 = vor.u32 %v874_v51, %v818_v50  ;;  %v810_v56 = vld [vmem:[%s1031_s27] sm:$0xf] }
  0x32   : > { %v823_v55 = vor.u32 %v873_v52, %v820_v53  ;;  %v872_v57 = vld [vmem:[%s1031_s27 + $0x4] sm:$0xf0]  ;;  %v871_v58 = vld [vmem:[%s1031_s27 + $0x4] sm:$0xf]  ;;  %v812_v59 = vld [vmem:[%s1031_s27 + $0x8] sm:$0xf0] }
  0x33   : > { %552 = vmatpush.bf16.msra.mxu0 %v851_v25  ;;  %571 = vmatpush.bf16.msra.mxu1 %v855_v26  ;;  %v658_v60 = vld [vmem:[%s1115_s6] sm:$0xff]  ;;  %v811_v62 = vor.u32 %v872_v57, %v810_v56  ;;  %v815_v63 = vor.u32 %v871_v58, %v812_v59  ;;  %v884_v1 = vld [vmem:[%s1110_s1 + $0x8] sm:$0xff]  ;;  %vm619_vm2 = vcmask 261120   ;;  %vm664_vm3 = vcmask 130048  }
  0x34   : > { %v696_v61 = vld [vmem:[%s1116_s7] sm:$0xff]  ;;  %v603_v8 = vld [vmem:[%s1113_s4 + $0x8] sm:$0xff]  ;;  %vm728_vm4 = vcmask 1040384  }
  0x35   : > { %v883_v0 = vld [vmem:[%s1110_s1] sm:$0xff] }
  0x36   : > { %458 = vperm.xlu0 %913, %v440_v46   ;;  %448 = vperm.xlu1 %914, %v438_v47   ;;  %v602_v4 = vld [vmem:[%s1113_s4] sm:$0xff] }
  0x37   : > { %553 = vmatpush.bf16.msra.mxu0 %v843_v34  ;;  %572 = vmatpush.bf16.msra.mxu1 %v847_v35  ;;  %v716_v12 = vld [vmem:[#allocation2] sm:$0x1] }
  0x38   : > { %606 = vperm.xlu2 %915, %v602_v4   ;;  %v885_v37 = vld [vmem:[%s1112_s3] sm:$0xff] }
  0x3b   : > { %554 = vmatpush.bf16.msra.mxu0 %v835_v40  ;;  %573 = vmatpush.bf16.msra.mxu1 %v839_v41 }
  0x3e   : > { %661 = vperm.xlu0 %913, %v658_v60   ;;  %699 = vperm.xlu1 %914, %v696_v61  }
  0x3f   : > { %555 = vmatpush.bf16.msra.mxu0 %v827_v48  ;;  %574 = vmatpush.bf16.msra.mxu1 %v831_v49 }
  0x40   : > { %611 = vperm.xlu2 %915, %v603_v8  }
  0x43   : > { %556 = vmatpush.bf16.msra.mxu0 %v819_v54  ;;  %575 = vmatpush.bf16.msra.mxu1 %v823_v55  ;;  %v655_v54 = vld [vmem:[%s1114_s5] sm:$0xf] }
  0x47   : > { %557 = vmatpush.bf16.msra.mxu0 %v811_v62  ;;  %576 = vmatpush.bf16.msra.mxu1 %v815_v63 }
  0x48   : > { %719 = vperm.xlu2 %915, %v716_v12  }
  0x4a   : > { %856 = vmatmul.msk.bf16.vlgmr.msra.gmra.mxu0 %vm536_vm1, %v883_v0  ;;  %858 = vmatmul.msk.bf16.vlgmr.msra.gmra.mxu1 %vm536_vm1, %v883_v0 }
  0x5a   : > { %857 = vmatmul.msk.bf16.gmra.mxu0 %vm536_vm1, %v884_v1  ;;  %859 = vmatmul.msk.bf16.gmra.mxu1 %vm536_vm1, %v884_v1 }
  0x92   : > { %v607_v38 = vpop.permute.xlu2 %606 }
  0x9a   : > { %v612_v41 = vpop.permute.xlu2 %611 }
  0xa0   : > { %v444_v7 = vpop.permute.xlu1 %443  ;;  %v454_v9 = vpop.permute.xlu0 %453 }
  0xa8   : > { %v449_v13 = vpop.permute.xlu1 %448  ;;  %v459_v14 = vpop.permute.xlu0 %458 }
  0xb0   : > { %v662_v55 = vpop.permute.xlu0 %661  ;;  %v700_v62 = vpop.permute.xlu1 %699 }
  0xc7   : > { %v559_v2 = vpop.f32.mrf.mxu0  ;;  %v578_v3 = vpop.f32.mrf.mxu1 }
  0xc8   : > { %v560_v23 = vadd.f32 %v559_v2, %v444_v7  ;;  %v579_v24 = vadd.f32 %v578_v3, %v444_v7 }
  0xca   : > { %v588_v33 = vmax.f32 %v560_v23, 0.0  ;;  %v589_v34 = vmax.f32 %v579_v24, 0.0 }
  0xcf   : > { %v561_v5 = vpop.f32.mrf.mxu0  ;;  %v580_v6 = vpop.f32.mrf.mxu1 }
  0xd0   : > { %v562_v19 = vadd.f32 %v561_v5, %v449_v13  ;;  %v581_v20 = vadd.f32 %v580_v6, %v449_v13 }
  0xd2   : > { %v590_v29 = vmax.f32 %v562_v19, 0.0  ;;  %v591_v30 = vmax.f32 %v581_v20, 0.0 }
  0xd4   : > { %v598_v35 = vpack.c.bf16 %v590_v29, %v588_v33  ;;  %v599_v36 = vpack.c.bf16 %v591_v30, %v589_v34 }
  0xd7   : > { %v564_v10 = vpop.f32.mrf.mxu0  ;;  %v583_v11 = vpop.f32.mrf.mxu1 }
  0xd8   : > { %v565_v15 = vadd.f32 %v564_v10, %v454_v9  ;;  %v584_v16 = vadd.f32 %v583_v11, %v454_v9  ;;  %v720_v11 = vpop.permute.xlu2 %719 }
  0xda   : > { %v592_v25 = vmax.f32 %v565_v15, 0.0  ;;  %v593_v26 = vmax.f32 %v584_v16, 0.0 }
  0xdf   : > { %v566_v17 = vpop.f32.mrf.mxu0  ;;  %v585_v18 = vpop.f32.mrf.mxu1 }
  0xe0   : > { %v567_v21 = vadd.f32 %v566_v17, %v459_v14  ;;  %v586_v22 = vadd.f32 %v585_v18, %v459_v14  ;;  %v722_v14 = vperm.slane %v720_v11, 0  ;;  %v731_v17 = vlaneseq }
  0xe2   : > { %v594_v27 = vmax.f32 %v567_v21, 0.0  ;;  %v595_v28 = vmax.f32 %v586_v22, 0.0  ;;  %vm733_vm5 = vcmp.lt.s32.totalorder %v731_v17, 256 }
  0xe4   : > { %v600_v31 = vpack.c.bf16 %v594_v27, %v592_v25  ;;  %v601_v32 = vpack.c.bf16 %v595_v28, %v593_v26 }
  0xe6   : > { %629 = vmatpush.bf16.msra.mxu2 %v600_v31  ;;  %643 = vmatpush.bf16.msra.mxu3 %v601_v32 }
  0xea   : > { %630 = vmatpush.bf16.msra.mxu2 %v598_v35  ;;  %644 = vmatpush.bf16.msra.mxu3 %v599_v36 }
  0xed   : > { %864 = vmatmul.msk.bf16.vlgmr.msra.gmra.mxu2 %vm619_vm2, %v885_v37  ;;  %865 = vmatmul.msk.bf16.vlgmr.msra.gmra.mxu3 %vm619_vm2, %v885_v37 }
 0x170   : > { %v632_v39 = vpop.f32.mrf.mxu2  ;;  %v646_v40 = vpop.f32.mrf.mxu3 }
 0x171   : > { %v633_v42 = vadd.f32 %v632_v39, %v607_v38  ;;  %v647_v43 = vadd.f32 %v646_v40, %v607_v38 }
 0x173   : > { %v651_v48 = vmax.f32 %v633_v42, 0.0  ;;  %v652_v49 = vmax.f32 %v647_v43, 0.0 }
 0x178   : > { %v634_v44 = vpop.f32.mrf.mxu2  ;;  %v648_v45 = vpop.f32.mrf.mxu3 }
 0x179   : > { %v635_v46 = vadd.f32 %v634_v44, %v612_v41  ;;  %v649_v47 = vadd.f32 %v648_v45, %v612_v41 }
 0x17b   : > { %v653_v50 = vmax.f32 %v635_v46, 0.0  ;;  %v654_v51 = vmax.f32 %v649_v47, 0.0 }
 0x17d   : > { %v656_v52 = vpack.c.bf16 %v653_v50, %v651_v48  ;;  %v657_v53 = vpack.c.bf16 %v654_v51, %v652_v49 }
 0x17f   : > { %675 = vmatpush.bf16.msrb.mxu2 %v656_v52  ;;  %688 = vmatpush.bf16.msrb.mxu3 %v657_v53 }
 0x182   : > { %866 = vmatmul.msk.bf16.vlgmr.msrb.gmra.mxu2 %vm664_vm3, %v655_v54  ;;  %867 = vmatmul.msk.bf16.vlgmr.msrb.gmra.mxu3 %vm664_vm3, %v655_v54 }
 0x205   : > { %v677_v56 = vpop.f32.mrf.mxu2  ;;  %v690_v57 = vpop.f32.mrf.mxu3 }
 0x206   : > { %v678_v58 = vadd.f32 %v677_v56, %v662_v55  ;;  %v691_v59 = vadd.f32 %v690_v57, %v662_v55 }
 0x208   : > { %v694_v60 = vmax.f32 %v678_v58, 0.0  ;;  %v695_v61 = vmax.f32 %v691_v59, 0.0 }
 0x20a   : > { %v702_v63 = vmul.f32 %v700_v62, %v694_v60  ;;  %v703_v0 = vmul.f32 %v700_v62, %v695_v61 }
 0x20c   : > { %v704_v1 = vrot.slane %v702_v63, 4  ;;  %v710_v2 = vrot.slane %v703_v0, 4 }
 0x20d   : > { %v692_v3 = vpop.f32.mrf.mxu3  ;;  %v679_v4 = vpop.f32.mrf.mxu2 }
 0x20e   : > { %v705_v5 = vadd.f32 %v704_v1, %v702_v63  ;;  %v711_v6 = vadd.f32 %v710_v2, %v703_v0 }
 0x210   : > { %v706_v7 = vrot.slane %v705_v5, 2  ;;  %v712_v8 = vrot.slane %v711_v6, 2 }
 0x212   : > { %v707_v9 = vadd.f32 %v706_v7, %v705_v5  ;;  %v713_v10 = vadd.f32 %v712_v8, %v711_v6 }
 0x214   : > { %v708_v12 = vrot.slane %v707_v9, 1  ;;  %v714_v13 = vrot.slane %v713_v10, 1 }
 0x216   : > { %v709_v15 = vadd.f32 %v708_v12, %v707_v9  ;;  %v715_v16 = vadd.f32 %v714_v13, %v713_v10 }
 0x218   : > { %v724_v18 = vadd.f32 %v722_v14, %v715_v16  ;;  %v723_v19 = vadd.f32 %v722_v14, %v709_v15 }
 0x21a   : > { %v727_v20 = vrot.slane %v724_v18, 7 }
 0x21c   : > { %v729_v21 = vsel %vm728_vm4, %v723_v19, %v727_v20 }
 0x21d   : > { %735 = vst.msk [vmem:[%s417_s13] sm:$0x3] %vm733_vm5, %v729_v21 }
 0x21e PF: > { %p18_p9 = scmp.ge.s32.totalorder %s1011_s14, 4   ;;  %s1119_s11 = smov %s934_s12 }
 0x21f   : > { %s1120_s12 = smov %s1020_s17  ;;  %s1121_s13 = smov %s1011_s14 }
 0x220   :  { %20 = sbr.rel (!%p18_p9) target bundleno = 5 (0x5), region = 129 }

</bundles_post_ra>
